<compile_context>
chip_gen: v5e
topology: v5e:2x2
jax: 0.10.0
libtpu: 0.0.40
codegen_flags: <defaults>
</compile_context>

<pallas_src>
import functools
import math

import jax
import jax.numpy as jnp
from jax import lax
from jax.experimental import pallas as pl
from jax.experimental.pallas import tpu as pltpu

_MAX_TILE_M = 1024   # rows per M tile; sweep 512-2048 if this ever matters


def _sublane(dtype) -> int:
    # minimum second-to-last tile dim: 8 (f32), 16 (bf16), 32 (int8/fp8)
    return 8 * max(1, 4 // jnp.dtype(dtype).itemsize)


def _round_up(v: int, m: int) -> int:
    return ((v + m - 1) // m) * m


def _choose_tile_m(m: int, dtype) -> int:
    sub = _sublane(dtype)
    if m <= 2 * sub:
        # Single block covering the full (possibly non-multiple-of-8) M dim.
        return m
    if m <= _MAX_TILE_M:
        # Split into >=2 blocks so the parallel M axis can use both v7x
        # TensorCores; tile must be a sublane multiple (ragged last block OK).
        return _round_up(-(-m // 2), sub)
    return _MAX_TILE_M  # multiple of 32, legal for every dtype


def _vmem_limit_bytes(tile_m, d0, d_last, params, x_dtype) -> int:
    isz = jnp.dtype(x_dtype).itemsize
    need = 2 * tile_m * d0 * isz + 2 * tile_m * d_last * isz  # x/out dbl-buf
    for w, b in params:  # weight/bias blocks are still double-buffered
        need += 2 * (w.size * w.dtype.itemsize + b.size * b.dtype.itemsize)
    max_d = max([d0, d_last] + [w.shape[1] for w, _ in params])
    need += 4 * tile_m * max_d * 4  # f32 intermediate working set, generous
    return int(min(max(2 * need, 16 << 20), 48 << 20))


def _fused_mlp_kernel(*refs, n_layers: int):
    """refs = (x_ref, w0_ref, b0_ref, ..., w_{L-1}_ref, b_{L-1}_ref, o_ref).

    x_ref: (TILE_M, D0), w_i: (D_i, D_{i+1}), b_i: (1, D_{i+1}),
    o_ref: (TILE_M, D_last).  Feature dims are the natural (unpadded) sizes.
    """
    x_ref = refs[0]
    o_ref = refs[-1]
    wb = refs[1:-1]

    h = x_ref[...]
    inv_sqrt2 = 1.0 / math.sqrt(2.0)
    for i in range(n_layers):
        w = wb[2 * i][...]
        b = wb[2 * i + 1][...]
        # MXU native-dtype matmul, f32 accumulation (no operand upcast).
        h = jnp.dot(h.astype(w.dtype), w, preferred_element_type=jnp.float32)
        h = h + b.astype(jnp.float32)
        if i != n_layers - 1:
            # Exact GELU (torch nn.GELU default, approximate='none'), in f32.
            # TODO(synk): if VALU-bound at large D, switch to tanh-GELU (EUP).
            h = 0.5 * h * (1.0 + lax.erf(h * inv_sqrt2))
    o_ref[...] = h.astype(o_ref.dtype)


def mlp_init_params(key, latents, bias=True):
    """Deterministic params matching the module's Linear shapes.

    Weights are stored pre-transposed as (Din, Dout) (vs torch's (out, in))
    so the forward pass does zero per-call transpose/pad work.  Bias is a
    (1, Dout) row (zeros when bias=False).
    """
    n_layers = len(latents) - 1
    if isinstance(bias, bool):
        bias = [bias] * n_layers
    params = []
    for i, (d_in, d_out) in enumerate(zip(latents, latents[1:])):
        key, kw, kb = jax.random.split(key, 3)
        bound = 1.0 / math.sqrt(d_in)
        w = jax.random.uniform(kw, (d_in, d_out), jnp.float32, -bound, bound)
        if bias[i]:
            b = jax.random.uniform(kb, (1, d_out), jnp.float32, -bound, bound)
        else:
            b = jnp.zeros((1, d_out), jnp.float32)
        params.append((w, b))
    return params


def mlp_forward(x, params):
    """x: (..., latents[0]) -> (..., latents[-1]).  dropout_prob=0 -> identity."""
    lead = x.shape[:-1]
    d0 = x.shape[-1]
    x2d = x.reshape((-1, d0))
    m = x2d.shape[0]
    n_layers = len(params)
    d_last = params[-1][0].shape[1]

    tile_m = _choose_tile_m(m, x.dtype)
    grid_m = pl.cdiv(m, tile_m)

    # x / out tile over M; weights & biases use constant index_maps so their
    # blocks stay resident in VMEM across the whole grid.
    in_specs = [pl.BlockSpec((tile_m, d0), lambda i: (i, 0))]
    args = [x2d]
    for (w, b) in params:
        in_specs.append(pl.BlockSpec(w.shape, lambda i: (0, 0)))
        in_specs.append(pl.BlockSpec(b.shape, lambda i: (0, 0)))
        args += [w, b]

    kernel = functools.partial(_fused_mlp_kernel, n_layers=n_layers)
    out = pl.pallas_call(
        kernel,
        out_shape=jax.ShapeDtypeStruct((m, d_last), x.dtype),
        grid=(grid_m,),
        in_specs=in_specs,
        out_specs=pl.BlockSpec((tile_m, d_last), lambda i: (i, 0)),
        compiler_params=pltpu.CompilerParams(
            dimension_semantics=("parallel",),
            vmem_limit_bytes=_vmem_limit_bytes(tile_m, d0, d_last, params,
                                               x.dtype),
        ),
    )(*args)

    return out.reshape(lead + (d_last,))


if __name__ == "__main__":
    key = jax.random.PRNGKey(0)
    latents = [16, 32, 32, 8]  # MLP([16, 32, 32, 8]) -> 3 Linear layers

    kx, kp = jax.random.split(key)
    x = jax.random.normal(kx, (2, 8, latents[0]), jnp.float32)  # (batch, seq, feat)
    params = mlp_init_params(kp, latents, bias=True)

    out = mlp_forward(x, params)
    out = jax.block_until_ready(out)

    assert out.shape == (2, 8, latents[-1]), out.shape
    assert out.dtype == jnp.float32

    # Pure-JAX reference (exact erf-GELU after every layer but the last).
    ref = x.reshape(-1, latents[0])
    for i, (w, b) in enumerate(params):
        ref = ref @ w + b
        if i != len(params) - 1:
            ref = 0.5 * ref * (1.0 + lax.erf(ref / math.sqrt(2.0)))
    ref = ref.reshape(2, 8, latents[-1])
    # Tolerance covers possible bf16-pass MXU precision on either path.
    assert jnp.allclose(out, ref, atol=1e-2, rtol=1e-2), (
        float(jnp.max(jnp.abs(out - ref))))

    print("KERNEL_OK")
</pallas_src>

<mosaic_0001>
module attributes {stable_mosaic.version = 11 : i64} {
  func.func @_fused_mlp_kernel(%arg0: i32, %arg1: memref<16x16xf32, #tpu.memory_space<vmem>>, %arg2: memref<16x32xf32, #tpu.memory_space<vmem>>, %arg3: memref<1x32xf32, #tpu.memory_space<vmem>>, %arg4: memref<32x32xf32, #tpu.memory_space<vmem>>, %arg5: memref<1x32xf32, #tpu.memory_space<vmem>>, %arg6: memref<32x8xf32, #tpu.memory_space<vmem>>, %arg7: memref<1x8xf32, #tpu.memory_space<vmem>>, %arg8: memref<16x8xf32, #tpu.memory_space<vmem>>) attributes {dimension_semantics = [#tpu.dimension_semantics<parallel>], iteration_bounds = array<i64: 1>, scalar_prefetch = 0 : i64, scratch_operands = 0 : i64, tpu.core_type = #tpu.core_type<tc>, window_params = [{transform_indices = @transform_0, window_bounds = array<i64: 16, 16>}, {pipeline_mode = #tpu.pipeline_mode<synchronous>, transform_indices = @transform_1, window_bounds = array<i64: 16, 32>}, {pipeline_mode = #tpu.pipeline_mode<synchronous>, transform_indices = @transform_2, window_bounds = array<i64: 1, 32>}, {pipeline_mode = #tpu.pipeline_mode<synchronous>, transform_indices = @transform_3, window_bounds = array<i64: 32, 32>}, {pipeline_mode = #tpu.pipeline_mode<synchronous>, transform_indices = @transform_4, window_bounds = array<i64: 1, 32>}, {pipeline_mode = #tpu.pipeline_mode<synchronous>, transform_indices = @transform_5, window_bounds = array<i64: 32, 8>}, {pipeline_mode = #tpu.pipeline_mode<synchronous>, transform_indices = @transform_6, window_bounds = array<i64: 1, 8>}, {transform_indices = @transform_7, window_bounds = array<i64: 16, 8>}]} {
    %c0 = arith.constant 0 : index
    %c0_0 = arith.constant 0 : index
    %0 = vector.load %arg1[%c0, %c0_0] : memref<16x16xf32, #tpu.memory_space<vmem>>, vector<16x16xf32>
    %c0_1 = arith.constant 0 : index
    %c0_2 = arith.constant 0 : index
    %1 = vector.load %arg2[%c0_1, %c0_2] : memref<16x32xf32, #tpu.memory_space<vmem>>, vector<16x32xf32>
    %c0_3 = arith.constant 0 : index
    %c0_4 = arith.constant 0 : index
    %2 = vector.load %arg3[%c0_3, %c0_4] : memref<1x32xf32, #tpu.memory_space<vmem>>, vector<1x32xf32>
    %cst = arith.constant dense<0.000000e+00> : vector<16x32xf32>
    %3 = tpu.matmul %0, %1, %cst {dimension_numbers = #tpu.dot_dimension_numbers<[1], [0], [0], [1], [0, 0, 1, 1], [], []>} : vector<16x16xf32>, vector<16x32xf32>, vector<16x32xf32> -> vector<16x32xf32>
    %4 = vector.broadcast %2 : vector<1x32xf32> to vector<16x32xf32>
    %5 = arith.addf %3, %4 : vector<16x32xf32>
    %cst_5 = arith.constant 5.000000e-01 : f32
    %6 = vector.broadcast %cst_5 : f32 to vector<16x32xf32>
    %7 = arith.mulf %6, %5 : vector<16x32xf32>
    %cst_6 = arith.constant 0.707106769 : f32
    %8 = vector.broadcast %cst_6 : f32 to vector<16x32xf32>
    %9 = arith.mulf %5, %8 : vector<16x32xf32>
    %10 = math.erf %9 : vector<16x32xf32>
    %cst_7 = arith.constant 1.000000e+00 : f32
    %11 = vector.broadcast %cst_7 : f32 to vector<16x32xf32>
    %12 = arith.addf %11, %10 : vector<16x32xf32>
    %13 = arith.mulf %7, %12 : vector<16x32xf32>
    %c0_8 = arith.constant 0 : index
    %c0_9 = arith.constant 0 : index
    %14 = vector.load %arg4[%c0_8, %c0_9] : memref<32x32xf32, #tpu.memory_space<vmem>>, vector<32x32xf32>
    %c0_10 = arith.constant 0 : index
    %c0_11 = arith.constant 0 : index
    %15 = vector.load %arg5[%c0_10, %c0_11] : memref<1x32xf32, #tpu.memory_space<vmem>>, vector<1x32xf32>
    %cst_12 = arith.constant dense<0.000000e+00> : vector<16x32xf32>
    %16 = tpu.matmul %13, %14, %cst_12 {dimension_numbers = #tpu.dot_dimension_numbers<[1], [0], [0], [1], [0, 0, 1, 1], [], []>} : vector<16x32xf32>, vector<32x32xf32>, vector<16x32xf32> -> vector<16x32xf32>
    %17 = vector.broadcast %15 : vector<1x32xf32> to vector<16x32xf32>
    %18 = arith.addf %16, %17 : vector<16x32xf32>
    %cst_13 = arith.constant 5.000000e-01 : f32
    %19 = vector.broadcast %cst_13 : f32 to vector<16x32xf32>
    %20 = arith.mulf %19, %18 : vector<16x32xf32>
    %cst_14 = arith.constant 0.707106769 : f32
    %21 = vector.broadcast %cst_14 : f32 to vector<16x32xf32>
    %22 = arith.mulf %18, %21 : vector<16x32xf32>
    %23 = math.erf %22 : vector<16x32xf32>
    %cst_15 = arith.constant 1.000000e+00 : f32
    %24 = vector.broadcast %cst_15 : f32 to vector<16x32xf32>
    %25 = arith.addf %24, %23 : vector<16x32xf32>
    %26 = arith.mulf %20, %25 : vector<16x32xf32>
    %c0_16 = arith.constant 0 : index
    %c0_17 = arith.constant 0 : index
    %27 = vector.load %arg6[%c0_16, %c0_17] : memref<32x8xf32, #tpu.memory_space<vmem>>, vector<32x8xf32>
    %c0_18 = arith.constant 0 : index
    %c0_19 = arith.constant 0 : index
    %28 = vector.load %arg7[%c0_18, %c0_19] : memref<1x8xf32, #tpu.memory_space<vmem>>, vector<1x8xf32>
    %cst_20 = arith.constant dense<0.000000e+00> : vector<16x8xf32>
    %29 = tpu.matmul %26, %27, %cst_20 {dimension_numbers = #tpu.dot_dimension_numbers<[1], [0], [0], [1], [0, 0, 1, 1], [], []>} : vector<16x32xf32>, vector<32x8xf32>, vector<16x8xf32> -> vector<16x8xf32>
    %30 = vector.broadcast %28 : vector<1x8xf32> to vector<16x8xf32>
    %31 = arith.addf %29, %30 : vector<16x8xf32>
    %c0_21 = arith.constant 0 : index
    %c0_22 = arith.constant 0 : index
    %32 = vector.load %arg8[%c0_21, %c0_22] : memref<16x8xf32, #tpu.memory_space<vmem>>, vector<16x8xf32>
    tpu.vector_store %arg8[%c0_21, %c0_22], %31 {strides = array<i32>} : memref<16x8xf32, #tpu.memory_space<vmem>>, vector<16x8xf32>,
    return
  }
  func.func @transform_0(%arg0: i32) -> (i32, i32) {
    %c0_i32 = arith.constant 0 : i32
    %c0_i32_0 = arith.constant 0 : i32
    return %arg0, %c0_i32 : i32, i32
  }
  func.func @transform_1(%arg0: i32) -> (i32, i32) {
    %c0_i32 = arith.constant 0 : i32
    %c0_i32_0 = arith.constant 0 : i32
    %c0_i32_1 = arith.constant 0 : i32
    return %c0_i32, %c0_i32_0 : i32, i32
  }
  func.func @transform_2(%arg0: i32) -> (i32, i32) {
    %c0_i32 = arith.constant 0 : i32
    %c0_i32_0 = arith.constant 0 : i32
    %c0_i32_1 = arith.constant 0 : i32
    return %c0_i32, %c0_i32_0 : i32, i32
  }
  func.func @transform_3(%arg0: i32) -> (i32, i32) {
    %c0_i32 = arith.constant 0 : i32
    %c0_i32_0 = arith.constant 0 : i32
    %c0_i32_1 = arith.constant 0 : i32
    return %c0_i32, %c0_i32_0 : i32, i32
  }
  func.func @transform_4(%arg0: i32) -> (i32, i32) {
    %c0_i32 = arith.constant 0 : i32
    %c0_i32_0 = arith.constant 0 : i32
    %c0_i32_1 = arith.constant 0 : i32
    return %c0_i32, %c0_i32_0 : i32, i32
  }
  func.func @transform_5(%arg0: i32) -> (i32, i32) {
    %c0_i32 = arith.constant 0 : i32
    %c0_i32_0 = arith.constant 0 : i32
    %c0_i32_1 = arith.constant 0 : i32
    return %c0_i32, %c0_i32_0 : i32, i32
  }
  func.func @transform_6(%arg0: i32) -> (i32, i32) {
    %c0_i32 = arith.constant 0 : i32
    %c0_i32_0 = arith.constant 0 : i32
    %c0_i32_1 = arith.constant 0 : i32
    return %c0_i32, %c0_i32_0 : i32, i32
  }
  func.func @transform_7(%arg0: i32) -> (i32, i32) {
    %c0_i32 = arith.constant 0 : i32
    %c0_i32_0 = arith.constant 0 : i32
    return %arg0, %c0_i32 : i32, i32
  }
}

</mosaic_0001>

<bundles_post_ra>
// kernel: tpu_custom_call.1
= control target key start
LH: loop header
LB: loop body
LE: loop exit
PB: predicated region body
PF: predicated region fallthrough
CT: control target
= control target key end

     0   :  { %12 = vsyncpa [#allocation3], 0  ;;  %s566_s0 = inlined_call_operand.hbm [shape: f32[16,16], index: 0, kind: input, shape index: {}]   ;;  %s567_s1 = inlined_call_operand.hbm [shape: f32[16,32], index: 1, kind: input, shape index: {}]   ;;  %s568_s2 = inlined_call_operand.vmem [shape: f32[1,32], index: 2, kind: input, shape index: {}]   ;;  %s569_s3 = inlined_call_operand.vmem [shape: f32[32,32], index: 3, kind: input, shape index: {}]   ;;  %s570_s4 = inlined_call_operand.vmem [shape: f32[1,32], index: 4, kind: input, shape index: {}]   ;;  %s571_s5 = inlined_call_operand.vmem [shape: f32[32,8], index: 5, kind: input, shape index: {}]   ;;  %s572_s6 = inlined_call_operand.vmem [shape: f32[1,8], index: 6, kind: input, shape index: {}]   ;;  %s573_s7 = inlined_call_operand.vmem [shape: f32[16,8], index: 7, kind: output, shape index: {}]  }
   0x1   :  { %s18_s26 = sshll.u32 %s566_s0, 4  ;;  %s19_s26 = int_to_ptr.hbm [resolvable:$true] %s18_s26 }
   0x2   :  { %13 = vsyncpa [#allocation5], 0  ;;  %s437_s27 = smov [#allocation2]   ;;  %s31_s8 = sshll.u32 %s567_s1, 4  ;;  %s32_s8 = int_to_ptr.hbm [resolvable:$true] %s31_s8 }
   0x3   :  { %s20_s28 = sshll.u32 %s437_s27, 4  ;;  %s438_s9 = smov 128   ;;  %s21_s28 = int_to_ptr.vmem [resolvable:$true] %s20_s28 }
   0x4   :  { %s439_s10 = smov 8   ;;  %s440_s11 = smov [#allocation4]  }
   0x5   :  { %26 = dma.hbm_to_vmem [thread:$0]  %s19_s26, 256, %s21_s28, [#allocation3], %s438_s9, %s438_s9, %s439_s10  }
   0x6   :  { %s33_s12 = sshll.u32 %s440_s11, 4  ;;  %s34_s12 = int_to_ptr.vmem [resolvable:$true] %s33_s12 }
   0x7   :  { %39 = dma.hbm_to_vmem [thread:$0]  %s32_s8, 256, %s34_s12, [#allocation5], %s438_s9, %s438_s9, %s439_s10  }
   0x8   :  { %433 = dma.done.wait [#allocation3], 256  }
   0x9   :  { %434 = vsyncadd [#allocation3], 4294967040 }
   0xa   :  { %435 = dma.done.wait [#allocation5], 256  }
   0xb   :  { %436 = vsyncadd [#allocation5], 4294967040  ;;  %v61_v0 = vld [vmem:[#allocation4 + $0x8] sm:$0xff]  ;;  %v60_v1 = vld [vmem:[#allocation4] sm:$0xff]  ;;  %vm66_vm0 = vcmask 130048   ;;  %vm192_vm7 = vcmask 261120  }
   0xc   :  { %87 = vmatpush.msra.mxu0 %v61_v0  ;;  %v58_v2 = vld [vmem:[#allocation2] sm:$0xff]  ;;  %v59_v3 = vld [vmem:[#allocation2 + $0x8] sm:$0xff]  ;;  %v187_v23 = vld [vmem:[%s569_s3 + $0x18] sm:$0xff] }
   0xd   :  { %v374_v4 = vld [vmem:[%s568_s2] ss:$0 sm:$0xff]  ;;  %211 = vmatpush.msra.mxu1 %v187_v23  ;;  %366 = vmatpush.msra.mxu3 %v187_v23  ;;  %v186_v27 = vld [vmem:[%s569_s3 + $0x10] sm:$0xff]  ;;  %v185_v32 = vld [vmem:[%s569_s3 + $0x8] sm:$0xff] }
   0xe   :  { %88 = vmatpush.msra.mxu0 %v60_v1  ;;  %v184_v36 = vld [vmem:[%s569_s3] sm:$0xff] }
   0xf   :  { %356 = vmatmul.msk.f32.vlgmr.msra.gmra.mxu0 %vm66_vm0, %v58_v2  ;;  %212 = vmatpush.msra.mxu1 %v186_v27 }
  0x10   :  { %367 = vmatpush.msra.mxu3 %v186_v27 }
  0x11   :  { %213 = vmatpush.msra.mxu1 %v185_v32 }
  0x12   :  { %368 = vmatpush.msra.mxu3 %v185_v32 }
  0x13   :  { %214 = vmatpush.msra.mxu1 %v184_v36 }
  0x14   :  { %369 = vmatpush.msra.mxu3 %v184_v36 }
  0x17   :  { %357 = vmatmul.msk.f32.gmra.mxu0 %vm66_vm0, %v59_v3 }
  0x8c   :  { %v90_v5 = vpop.f32.mrf.mxu0 }
  0x8d   :  { %v490_v6 = vadd.f32 %v374_v4, %v90_v5 }
  0x8f   :  { %v493_v7 = vmul.f32 0.70710677, %v490_v6 }
  0x91   :  { %v100_v8 = vmul.f32 %v493_v7, %v493_v7 }
  0x93   :  { %v101_v9 = vmin.f32 %v100_v8, 16.0 }
  0x94   :  { %v93_v10 = vpop.f32.mrf.mxu0 }
  0x95   :  { %v102_v11 = vmul.f32 2.1237322e-06, %v101_v9  ;;  %v113_v12 = vmul.f32 3.8918573e-05, %v101_v9  ;;  %v497_v13 = vadd.f32 %v374_v4, %v93_v10 }
  0x97   :  { %v103_v14 = vadd.f32 0.00028619796, %v102_v11  ;;  %v114_v15 = vadd.f32 0.001143296, %v113_v12  ;;  %v500_v16 = vmul.f32 0.70710677, %v497_v13 }
  0x98   :  { %v97_v27 = vmul.f32 0.5, %v497_v13 }
  0x99   :  { %v104_v17 = vmul.f32 %v103_v14, %v101_v9  ;;  %v115_v18 = vmul.f32 %v114_v15, %v101_v9  ;;  %v140_v19 = vmul.f32 %v500_v16, %v500_v16 }
  0x9b   :  { %v116_v20 = vadd.f32 0.014752088, %v115_v18  ;;  %v105_v21 = vadd.f32 0.0036580483, %v104_v17  ;;  %v141_v22 = vmin.f32 %v140_v19, 16.0  ;;  %v96_v18 = vmul.f32 0.5, %v490_v6 }
  0x9d   :  { %v117_v24 = vmul.f32 %v116_v20, %v101_v9  ;;  %v142_v25 = vmul.f32 2.1237322e-06, %v141_v22  ;;  %v153_v26 = vmul.f32 3.8918573e-05, %v141_v22  ;;  %v106_v29 = vmul.f32 %v105_v21, %v101_v9 }
  0x9f   :  { %v118_v28 = vadd.f32 0.112945676, %v117_v24  ;;  %v143_v30 = vadd.f32 0.00028619796, %v142_v25  ;;  %v154_v31 = vadd.f32 0.001143296, %v153_v26 }
  0xa0   :  { %v107_v38 = vadd.f32 0.05243302, %v106_v29  ;;  %v375_v29 = vld [vmem:[%s570_s4] ss:$0 sm:$0xff] }
  0xa1   :  { %v119_v33 = vmul.f32 %v118_v28, %v101_v9  ;;  %v144_v34 = vmul.f32 %v143_v30, %v141_v22  ;;  %v155_v35 = vmul.f32 %v154_v31, %v141_v22 }
  0xa2   :  { %v108_v44 = vmul.f32 %v107_v38, %v101_v9 }
  0xa3   :  { %v120_v37 = vadd.f32 0.4994258, %v119_v33  ;;  %v156_v39 = vadd.f32 0.014752088, %v155_v35  ;;  %v145_v41 = vadd.f32 0.0036580483, %v144_v34 }
  0xa4   :  { %v109_v48 = vadd.f32 0.18741608, %v108_v44 }
  0xa5   :  { %v121_v40 = vmul.f32 %v120_v37, %v101_v9  ;;  %v157_v42 = vmul.f32 %v156_v39, %v141_v22  ;;  %v146_v46 = vmul.f32 %v145_v41, %v141_v22 }
  0xa6   :  { %v110_v53 = vmul.f32 %v109_v48, %v101_v9 }
  0xa7   :  { %v122_v43 = vadd.f32 1.0, %v121_v40  ;;  %v158_v45 = vadd.f32 0.112945676, %v157_v42  ;;  %v147_v50 = vadd.f32 0.05243302, %v146_v46  ;;  %v312_v46 = vld [vmem:[%s571_s5 + $0x10] sm:$0xff] }
  0xa8   :  { %v111_v59 = vadd.f32 1.1283791, %v110_v53  ;;  %v310_v53 = vld [vmem:[%s571_s5] sm:$0xff] }
  0xa9   :  { %377 = vrcp.f32 %v122_v43  ;;  %v159_v47 = vmul.f32 %v158_v45, %v141_v22  ;;  %v148_v56 = vmul.f32 %v147_v50, %v141_v22  ;;  %v134_v58 = vand.u32 2147483648, %v122_v43  ;;  %v311_v50 = vld [vmem:[%s571_s5 + $0x8] sm:$0xff] }
  0xaa   :  { %v132_v61 = vand.u32 2147483647, %v122_v43  ;;  %vm128_vm2 = vweird.f32 %v122_v43  ;;  %v112_v2 = vmul.f32 %v111_v59, %v493_v7 }
  0xab   :  { %v160_v49 = vadd.f32 0.4994258, %v159_v47  ;;  %v149_v62 = vadd.f32 0.18741608, %v148_v56  ;;  %v135_v0 = vor.u32 1.1754944e-38, %v134_v58 }
  0xac   :  { %vm133_vm4 = vcmp.eq.f32.partialorder %v132_v61, 8.507059e+37 }
  0xad   :  { %v161_v51 = vmul.f32 %v160_v49, %v141_v22  ;;  %v150_v5 = vmul.f32 %v149_v62, %v141_v22 }
  0xaf   :  { %v378_v52 = vpop.eup %377  ;;  %v162_v55 = vadd.f32 1.0, %v161_v51  ;;  %v151_v14 = vadd.f32 1.1283791, %v150_v5 }
  0xb0   :  { %v124_v54 = vmul.f32 %v378_v52, %v122_v43  ;;  %vm129_vm1 = vweird.f32 %v378_v52  ;;  %v313_v43 = vld [vmem:[%s571_s5 + $0x18] sm:$0xff] }
  0xb1   :  { %379 = vrcp.f32 %v162_v55  ;;  %vm130_vm3 = vmor %vm128_vm2, %vm129_vm1  ;;  %v174_v11 = vand.u32 2147483648, %v162_v55  ;;  %v172_v17 = vand.u32 2147483647, %v162_v55  ;;  %vm168_vm6 = vweird.f32 %v162_v55  ;;  %336 = vmatpush.msra.mxu2 %v313_v43 }
  0xb2   :  { %v125_v57 = vsub.f32 1.0, %v124_v54  ;;  %v152_v22 = vmul.f32 %v151_v14, %v500_v16  ;;  %vm347_vm2 = vcmask 64512  }
  0xb3   :  { %v175_v7 = vor.u32 1.1754944e-38, %v174_v11  ;;  %vm173_vm9 = vcmp.eq.f32.partialorder %v172_v17, 8.507059e+37  ;;  %337 = vmatpush.msra.mxu2 %v312_v46 }
  0xb4   :  { %v126_v60 = vmul.f32 %v378_v52, %v125_v57 }
  0xb5   :  { %338 = vmatpush.msra.mxu2 %v311_v50 }
  0xb6   :  { %v127_v63 = vadd.f32 %v378_v52, %v126_v60 }
  0xb7   :  { %v380_v1 = vpop.eup %379  ;;  %339 = vmatpush.msra.mxu2 %v310_v53 }
  0xb8   :  { %v131_v3 = vsel %vm130_vm3, %v378_v52, %v127_v63  ;;  %v164_v8 = vmul.f32 %v380_v1, %v162_v55  ;;  %vm169_vm5 = vweird.f32 %v380_v1 }
  0xb9   :  { %v136_v4 = vsel %vm133_vm4, %v135_v0, %v131_v3  ;;  %vm170_vm8 = vmor %vm168_vm6, %vm169_vm5 }
  0xba   :  { %v137_v9 = vmul.f32 %v136_v4, %v112_v2  ;;  %v165_v10 = vsub.f32 1.0, %v164_v8 }
  0xbc   :  { %v358_v12 = vclamps-f32 %v137_v9, 1.0  ;;  %v166_v15 = vmul.f32 %v380_v1, %v165_v10 }
  0xbe   :  { %v180_v19 = vadd.f32 1.0, %v358_v12  ;;  %v167_v20 = vadd.f32 %v380_v1, %v166_v15 }
  0xc0   :  { %v182_v21 = vmul.f32 %v180_v19, %v96_v18  ;;  %v171_v23 = vsel %vm170_vm8, %v380_v1, %v167_v20 }
  0xc1   :  { %v176_v24 = vsel %vm173_vm9, %v175_v7, %v171_v23 }
  0xc2   :  { %360 = vmatmul.msk.f32.vlgmr.msra.gmra.mxu1 %vm192_vm7, %v182_v21  ;;  %v177_v25 = vmul.f32 %v176_v24, %v152_v22 }
  0xc4   :  { %v359_v26 = vclamps-f32 %v177_v25, 1.0 }
  0xc6   :  { %v181_v28 = vadd.f32 1.0, %v359_v26 }
  0xc8   :  { %v183_v6 = vmul.f32 %v181_v28, %v97_v27 }
  0xca   :  { %361 = vmatmul.msk.f32.vlgmr.msra.gmra.mxu3 %vm192_vm7, %v183_v6 }
 0x13f   :  { %v216_v30 = vpop.f32.mrf.mxu1 }
 0x140   :  { %v525_v31 = vadd.f32 %v375_v29, %v216_v30 }
 0x142   :  { %v528_v16 = vmul.f32 0.70710677, %v525_v31 }
 0x144   :  { %v226_v32 = vmul.f32 %v528_v16, %v528_v16 }
 0x146   :  { %v227_v33 = vmin.f32 %v226_v32, 16.0 }
 0x148   :  { %v228_v34 = vmul.f32 2.1237322e-06, %v227_v33  ;;  %v239_v13 = vmul.f32 3.8918573e-05, %v227_v33 }
 0x14a   :  { %v229_v35 = vadd.f32 0.00028619796, %v228_v34  ;;  %v240_v36 = vadd.f32 0.001143296, %v239_v13 }
 0x14c   :  { %v230_v37 = vmul.f32 %v229_v35, %v227_v33  ;;  %v241_v38 = vmul.f32 %v240_v36, %v227_v33 }
 0x14d   :  { %v219_v41 = vpop.f32.mrf.mxu3 }
 0x14e   :  { %v231_v39 = vadd.f32 0.0036580483, %v230_v37  ;;  %v242_v40 = vadd.f32 0.014752088, %v241_v38  ;;  %v532_v42 = vadd.f32 %v375_v29, %v219_v41 }
 0x150   :  { %v243_v44 = vmul.f32 %v242_v40, %v227_v33  ;;  %v538_v45 = vmul.f32 0.70710677, %v532_v42  ;;  %v232_v47 = vmul.f32 %v231_v39, %v227_v33 }
 0x152   :  { %v244_v48 = vadd.f32 0.112945676, %v243_v44  ;;  %v266_v49 = vmul.f32 %v538_v45, %v538_v45  ;;  %v233_v54 = vadd.f32 0.05243302, %v232_v47 }
 0x154   :  { %v245_v51 = vmul.f32 %v244_v48, %v227_v33  ;;  %v267_v52 = vmin.f32 %v266_v49, 16.0  ;;  %v234_v61 = vmul.f32 %v233_v54, %v227_v33  ;;  %v223_v49 = vmul.f32 0.5, %v532_v42 }
 0x156   :  { %v246_v55 = vadd.f32 0.4994258, %v245_v51  ;;  %v268_v56 = vmul.f32 2.1237322e-06, %v267_v52  ;;  %v279_v57 = vmul.f32 3.8918573e-05, %v267_v52 }
 0x157   :  { %v235_v2 = vadd.f32 0.18741608, %v234_v61 }
 0x158   :  { %v247_v58 = vmul.f32 %v246_v55, %v227_v33  ;;  %v269_v59 = vadd.f32 0.00028619796, %v268_v56  ;;  %v280_v60 = vadd.f32 0.001143296, %v279_v57 }
 0x159   :  { %v236_v9 = vmul.f32 %v235_v2, %v227_v33  ;;  %v222_v33 = vmul.f32 0.5, %v525_v31 }
 0x15a   :  { %v248_v62 = vadd.f32 1.0, %v247_v58  ;;  %v270_v63 = vmul.f32 %v269_v59, %v267_v52  ;;  %v281_v0 = vmul.f32 %v280_v60, %v267_v52 }
 0x15b   :  { %v237_v17 = vadd.f32 1.1283791, %v236_v9 }
 0x15c   :  { %381 = vrcp.f32 %v248_v62  ;;  %v282_v1 = vadd.f32 0.014752088, %v281_v0  ;;  %v271_v3 = vadd.f32 0.0036580483, %v270_v63  ;;  %v260_v18 = vand.u32 2147483648, %v248_v62 }
 0x15d   :  { %v258_v7 = vand.u32 2147483647, %v248_v62  ;;  %vm254_vm11 = vweird.f32 %v248_v62  ;;  %v238_v26 = vmul.f32 %v237_v17, %v528_v16 }
 0x15e   :  { %v283_v4 = vmul.f32 %v282_v1, %v267_v52  ;;  %v272_v10 = vmul.f32 %v271_v3, %v267_v52  ;;  %v261_v24 = vor.u32 1.1754944e-38, %v260_v18 }
 0x15f   :  { %vm259_vm13 = vcmp.eq.f32.partialorder %v258_v7, 8.507059e+37 }
 0x160   :  { %v284_v5 = vadd.f32 0.112945676, %v283_v4  ;;  %v273_v19 = vadd.f32 0.05243302, %v272_v10 }
 0x162   :  { %v382_v8 = vpop.eup %381  ;;  %v285_v12 = vmul.f32 %v284_v5, %v267_v52  ;;  %v274_v25 = vmul.f32 %v273_v19, %v267_v52 }
 0x163   :  { %v250_v11 = vmul.f32 %v382_v8, %v248_v62  ;;  %vm255_vm10 = vweird.f32 %v382_v8 }
 0x164   :  { %v286_v15 = vadd.f32 0.4994258, %v285_v12  ;;  %vm256_vm12 = vmor %vm254_vm11, %vm255_vm10  ;;  %v275_v29 = vadd.f32 0.18741608, %v274_v25 }
 0x165   :  { %v251_v14 = vsub.f32 1.0, %v250_v11 }
 0x166   :  { %v287_v21 = vmul.f32 %v286_v15, %v267_v52  ;;  %v276_v13 = vmul.f32 %v275_v29, %v267_v52  ;;  %v376_v52 = vld [vmem:[%s572_s6] ss:$0 sm:$0xff] }
 0x167   :  { %v252_v20 = vmul.f32 %v382_v8, %v251_v14 }
 0x168   :  { %v288_v23 = vadd.f32 1.0, %v287_v21  ;;  %v277_v39 = vadd.f32 1.1283791, %v276_v13 }
 0x169   :  { %v253_v22 = vadd.f32 %v382_v8, %v252_v20 }
 0x16a   :  { %383 = vrcp.f32 %v288_v23  ;;  %v300_v38 = vand.u32 2147483648, %v288_v23  ;;  %v298_v40 = vand.u32 2147483647, %v288_v23  ;;  %vm294_vm15 = vweird.f32 %v288_v23 }
 0x16b   :  { %v257_v27 = vsel %vm256_vm12, %v382_v8, %v253_v22  ;;  %v278_v44 = vmul.f32 %v277_v39, %v538_v45 }
 0x16c   :  { %v262_v28 = vsel %vm259_vm13, %v261_v24, %v257_v27  ;;  %v301_v43 = vor.u32 1.1754944e-38, %v300_v38  ;;  %vm299_vm1 = vcmp.eq.f32.partialorder %v298_v40, 8.507059e+37 }
 0x16d   :  { %v263_v6 = vmul.f32 %v262_v28, %v238_v26 }
 0x16f   :  { %v362_v30 = vclamps-f32 %v263_v6, 1.0 }
 0x170   :  { %v384_v32 = vpop.eup %383 }
 0x171   :  { %v306_v34 = vadd.f32 1.0, %v362_v30  ;;  %v290_v35 = vmul.f32 %v384_v32, %v288_v23  ;;  %vm295_vm14 = vweird.f32 %v384_v32 }
 0x172   :  { %vm296_vm0 = vmor %vm294_vm15, %vm295_vm14 }
 0x173   :  { %v308_v36 = vmul.f32 %v306_v34, %v222_v33  ;;  %v291_v37 = vsub.f32 1.0, %v290_v35 }
 0x175   :  { %364 = vmatmul.msk.f32.vlgmr.msra.gmra.mxu2 %vm192_vm7, %v308_v36  ;;  %v292_v16 = vmul.f32 %v384_v32, %v291_v37 }
 0x177   :  { %v293_v41 = vadd.f32 %v384_v32, %v292_v16 }
 0x179   :  { %v297_v46 = vsel %vm296_vm0, %v384_v32, %v293_v41 }
 0x17a   :  { %v302_v31 = vsel %vm299_vm1, %v301_v43, %v297_v46 }
 0x17b   :  { %v303_v47 = vmul.f32 %v302_v31, %v278_v44 }
 0x17d   :  { %v363_v48 = vclamps-f32 %v303_v47, 1.0 }
 0x17f   :  { %v307_v50 = vadd.f32 1.0, %v363_v48 }
 0x181   :  { %v309_v51 = vmul.f32 %v307_v50, %v223_v49 }
 0x183   :  { %365 = vmatmul.msk.f32.gmra.mxu2 %vm192_vm7, %v309_v51 }
 0x1f8   :  { %v341_v53 = vpop.f32.mrf.mxu2 }
 0x1f9   :  { %v342_v54 = vadd.f32 %v376_v52, %v341_v53 }
 0x1fb   :  { %348 = vst.msk [vmem:[%s573_s7] sm:$0xff] %vm347_vm2, %v342_v54 }
 0x206   :  { %v344_v45 = vpop.f32.mrf.mxu2 }
 0x207   :  { %v345_v55 = vadd.f32 %v376_v52, %v344_v45 }
 0x209   :  { %349 = vst.msk [vmem:[%s573_s7 + $0x8] sm:$0xff] %vm347_vm2, %v345_v55 }
 0x20a   :  { %354 = vsyncpa [#allocation3], 1 }
 0x20b   :  { %355 = vsyncpa [#allocation5], 1 }

</bundles_post_ra>
